<compile_context>
chip_gen: v7x
topology: tpu7x:2x2x1
jax: 0.10.0
libtpu: 0.0.40
codegen_flags: <defaults>
</compile_context>

<pallas_src>
import functools

import jax
import jax.numpy as jnp
from jax.experimental import pallas as pl
from jax.experimental.pallas import tpu as pltpu


def chaotic_attention_kernel(x_ref, h_ref, o_ref):
    # x_ref: (TB, S, D), h_ref: (TB, D), o_ref: (TB, D)   -- all VMEM tiles
    x = x_ref[...]                                    # (TB, S, D)
    h = h_ref[...]                                    # (TB, D)

    # scores[b, s] = <x[b, s, :], h[b, :]>   (VPU mul + lane reduce, no MXU)
    scores = jnp.sum(x * h[:, None, :], axis=-1)      # (TB, S)

    # softmax over the sequence axis (PyTorch Softmax(dim=1) on (B, S)),
    # with deferred normalization.
    m = jnp.max(scores, axis=1, keepdims=True)        # (TB, 1)
    p = jnp.exp(scores - m)                           # (TB, S)
    denom = jnp.sum(p, axis=1, keepdims=True)         # (TB, 1)

    # content_unnorm[b, d] = sum_s p[b, s] * x[b, s, d]  (VPU mul + sublane reduce)
    unnorm = jnp.sum(p[:, :, None] * x, axis=1)       # (TB, D)

    # single per-row normalization at the end
    o_ref[...] = (unnorm / denom).astype(o_ref.dtype)


def _choose_tb(B, S, D, target_block_bytes=8 * 1024 * 1024):
    """Pick a batch tile: multiple of 8 (sublane dense), x block ~<= 8 MiB."""
    per_batch_bytes = max(S * D * 4, 1)
    tb = max(1, target_block_bytes // per_batch_bytes)
    tb = max(8, (tb // 8) * 8)                  # >= 8 and a multiple of 8
    b_pad8 = ((B + 7) // 8) * 8
    tb = min(tb, b_pad8)
    # Prefer >= 2 grid steps when there is enough work (v7x has 2 TensorCores).
    if b_pad8 >= 16 and b_pad8 // tb < 2:
        tb = max(8, ((b_pad8 // 2) // 8) * 8)
    return tb


@functools.partial(jax.jit, static_argnames=())
def chaotic_attention(x, h):
    """x: (B, S, D) f32, h: (B, D) f32 -> (B, 1, D) f32."""
    B, S, D = x.shape
    assert h.shape == (B, D)

    tb = _choose_tb(B, S, D)
    b_pad = ((B + tb - 1) // tb) * tb
    if b_pad != B:
        # Zero padding is safe: padded rows give scores=0, uniform softmax,
        # content=0; they are sliced off below.
        x_p = jnp.pad(x, ((0, b_pad - B), (0, 0), (0, 0)))
        h_p = jnp.pad(h, ((0, b_pad - B), (0, 0)))
    else:
        x_p, h_p = x, h

    n_blocks = b_pad // tb

    # Rough roofline hints for the XLA scheduler.
    cost = pl.CostEstimate(
        flops=4 * b_pad * S * D,
        transcendentals=b_pad * S,
        bytes_accessed=4 * (b_pad * S * D + 2 * b_pad * D),
    )

    # Keep comfortably inside scoped VMEM on all generations (incl. v7x 64 MiB
    # physical); blocks here are sized so the default 16-32 MiB scope suffices,
    # but leave explicit headroom for the double-buffered x tiles.
    block_bytes = tb * S * D * 4 + 2 * tb * D * 4
    vmem_limit = min(96 * 1024 * 1024, max(32 * 1024 * 1024, 3 * block_bytes))

    out = pl.pallas_call(
        chaotic_attention_kernel,
        out_shape=jax.ShapeDtypeStruct((b_pad, D), x.dtype),
        grid_spec=pltpu.PrefetchScalarGridSpec(
            num_scalar_prefetch=0,
            grid=(n_blocks,),
            in_specs=[
                pl.BlockSpec((tb, S, D), lambda b: (b, 0, 0)),
                pl.BlockSpec((tb, D), lambda b: (b, 0)),
            ],
            out_specs=pl.BlockSpec((tb, D), lambda b: (b, 0)),
        ),
        compiler_params=pltpu.CompilerParams(
            dimension_semantics=("parallel",),
            vmem_limit_bytes=vmem_limit,
        ),
        cost_estimate=cost,
    )(x_p, h_p)

    # Slice off padded rows and restore the (B, 1, D) module output shape.
    return out[:B].reshape(B, 1, D)


def chaotic_attention_ref(x, h):
    # Pure-JAX reference mirroring the PyTorch forward.
    scores = jnp.einsum("bsd,bd->bs", x, h)                 # bmm(x, h.unsqueeze(2)).squeeze(2)
    alpha = jax.nn.softmax(scores, axis=1)                  # Softmax(dim=1)
    content = jnp.einsum("bs,bsd->bd", alpha, x)[:, None]   # bmm(alpha.unsqueeze(1), x)
    return content


if __name__ == "__main__":
    key = jax.random.PRNGKey(0)
    kx, kh = jax.random.split(key)
    B, S, D = 2, 8, 32
    x = jax.random.normal(kx, (B, S, D), dtype=jnp.float32)
    h = jax.random.normal(kh, (B, D), dtype=jnp.float32)

    out = chaotic_attention(x, h)
    out = jax.block_until_ready(out)

    ref = chaotic_attention_ref(x, h)
    assert out.shape == (B, 1, D), out.shape
    assert jnp.allclose(out, ref, atol=1e-5, rtol=1e-5), "mismatch vs reference"

    print("KERNEL_OK")
</pallas_src>

<mosaic_0001>
module attributes {stable_mosaic.version = 11 : i64} {
  func.func @chaotic_attention_kernel(%arg0: i32, %arg1: memref<8x8x32xf32, #tpu.memory_space<vmem>>, %arg2: memref<8x32xf32, #tpu.memory_space<vmem>>, %arg3: memref<8x32xf32, #tpu.memory_space<vmem>>) attributes {dimension_semantics = [#tpu.dimension_semantics<parallel>], iteration_bounds = array<i64: 1>, scalar_prefetch = 0 : i64, scratch_operands = 0 : i64, tpu.core_type = #tpu.core_type<tc>, window_params = [{transform_indices = @transform_0, window_bounds = array<i64: 8, 8, 32>}, {transform_indices = @transform_1, window_bounds = array<i64: 8, 32>}, {transform_indices = @transform_2, window_bounds = array<i64: 8, 32>}]} {
    %c0 = arith.constant 0 : index
    %c0_0 = arith.constant 0 : index
    %c0_1 = arith.constant 0 : index
    %0 = vector.load %arg1[%c0, %c0_0, %c0_1] : memref<8x8x32xf32, #tpu.memory_space<vmem>>, vector<8x8x32xf32>
    %c0_2 = arith.constant 0 : index
    %c0_3 = arith.constant 0 : index
    %1 = vector.load %arg2[%c0_2, %c0_3] : memref<8x32xf32, #tpu.memory_space<vmem>>, vector<8x32xf32>
    %2 = vector.shape_cast %1 : vector<8x32xf32> to vector<8x1x32xf32>
    %3 = vector.broadcast %2 : vector<8x1x32xf32> to vector<8x8x32xf32>
    %4 = arith.mulf %0, %3 : vector<8x8x32xf32>
    %cst = arith.constant dense<0.000000e+00> : vector<8x8xf32>
    %5 = vector.multi_reduction <add>, %4, %cst [2] : vector<8x8x32xf32> to vector<8x8xf32>
    %cst_4 = arith.constant dense<0xFF800000> : vector<8xf32>
    %6 = vector.multi_reduction <maximumf>, %5, %cst_4 [1] : vector<8x8xf32> to vector<8xf32>
    %7 = vector.shape_cast %6 : vector<8xf32> to vector<8x1xf32>
    %8 = vector.broadcast %7 : vector<8x1xf32> to vector<8x8xf32>
    %9 = arith.subf %5, %8 : vector<8x8xf32>
    %10 = math.exp %9 : vector<8x8xf32>
    %cst_5 = arith.constant dense<0.000000e+00> : vector<8xf32>
    %11 = vector.multi_reduction <add>, %10, %cst_5 [1] : vector<8x8xf32> to vector<8xf32>
    %12 = vector.shape_cast %11 : vector<8xf32> to vector<8x1xf32>
    %13 = vector.shape_cast %10 : vector<8x8xf32> to vector<8x8x1xf32>
    %14 = vector.broadcast %13 : vector<8x8x1xf32> to vector<8x8x32xf32>
    %15 = arith.mulf %14, %0 : vector<8x8x32xf32>
    %cst_6 = arith.constant dense<0.000000e+00> : vector<8x32xf32>
    %16 = vector.multi_reduction <add>, %15, %cst_6 [1] : vector<8x8x32xf32> to vector<8x32xf32>
    %17 = vector.broadcast %12 : vector<8x1xf32> to vector<8x32xf32>
    %18 = arith.divf %16, %17 : vector<8x32xf32>
    %c0_7 = arith.constant 0 : index
    %c0_8 = arith.constant 0 : index
    %19 = vector.load %arg3[%c0_7, %c0_8] : memref<8x32xf32, #tpu.memory_space<vmem>>, vector<8x32xf32>
    tpu.vector_store %arg3[%c0_7, %c0_8], %18 {strides = array<i32>} : memref<8x32xf32, #tpu.memory_space<vmem>>, vector<8x32xf32>,
    return
  }
  func.func @transform_0(%arg0: i32) -> (i32, i32, i32) {
    %c0_i32 = arith.constant 0 : i32
    %c0_i32_0 = arith.constant 0 : i32
    %c0_i32_1 = arith.constant 0 : i32
    return %arg0, %c0_i32, %c0_i32_0 : i32, i32, i32
  }
  func.func @transform_1(%arg0: i32) -> (i32, i32) {
    %c0_i32 = arith.constant 0 : i32
    %c0_i32_0 = arith.constant 0 : i32
    return %arg0, %c0_i32 : i32, i32
  }
  func.func @transform_2(%arg0: i32) -> (i32, i32) {
    %c0_i32 = arith.constant 0 : i32
    %c0_i32_0 = arith.constant 0 : i32
    return %arg0, %c0_i32 : i32, i32
  }
}

</mosaic_0001>

<bundles_post_ra>
// kernel: chaotic_attention.1
= control target key start
LH: loop header
LB: loop body
LE: loop exit
PB: predicated region body
PF: predicated region fallthrough
CT: control target
= control target key end

     0   :  { %v25_v0 = vlaneseq  ;;  %v513_v1 = vmov 1966171168   ;;  %vm118_vm0 = vcmask 261120   ;;  %vm185_vm1 = vcmask 1041409   ;;  %s677_s1 = inlined_call_operand.vmem [shape: f32[8,32], index: 1, kind: input, shape index: {}]   ;;  %s678_s0 = inlined_call_operand.vmem [shape: f32[8,8,32], index: 0, kind: input, shape index: {}]   ;;  %s679_s2 = inlined_call_operand.vmem [shape: f32[8,32], index: 2, kind: output, shape index: {}]  }
   0x1   :  { %v23_v2 = vunpack.c.l.s4 %v513_v1  ;;  %v19_v3 = vld [vmem:[%s677_s1] sm:$0xff]  ;;  %v551_v22 = vld [vmem:[%s678_s0 + $0x10] sm:$0xff]  ;;  %v556_v23 = vld [vmem:[%s678_s0 + $0x8] sm:$0xff]  ;;  %vm187_vm2 = vcmask 1042434   ;;  %vm189_vm3 = vcmask 1043459   ;;  %vm191_vm4 = vcmask 1044484  }
   0x2   :  { %v533_v4 = vshrl.u32 %v25_v0, 7  ;;  %v152_v5 = vand.u32 127, %v25_v0  ;;  %v21_v6 = vcombine.high %v19_v3, %v19_v3  ;;  %v545_v17 = vld [vmem:[%s678_s0] sm:$0xff]  ;;  %v561_v24 = vld [vmem:[%s678_s0 + $0x28] sm:$0xff]  ;;  %v580_v38 = vld [vmem:[%s678_s0 + $0x18] sm:$0xff]  ;;  %vm193_vm5 = vcmask 1045509  }
   0x3   :  { %v24_v7 = vunpack.c.0.s8 %v23_v2  ;;  %v571_v31 = vld [vmem:[%s678_s0 + $0x20] sm:$0xff]  ;;  %v590_v44 = vld [vmem:[%s678_s0 + $0x30] sm:$0xff]  ;;  %v598_v48 = vld [vmem:[%s678_s0 + $0x38] sm:$0xff]  ;;  %vm195_vm6 = vcmask 1046534   ;;  %vm197_vm7 = vcmask 1047559   ;;  %vm200_vm8 = vcmask 64512  }
   0x4   :  { %v536_v8 = vsub.s32 %v152_v5, %v533_v4  ;;  %v540_v11 = vsub.s32 0, %v533_v4 }
   0x5   :  { %v27_v9 = vsub.s32 %v24_v7, %v533_v4 }
   0x7   :  { %v28_v10 = vrot.slane %v19_v3, %v27_v9  ;;  %v35_v12 = vrot.slane %v21_v6, %v27_v9 }
   0x9   :  { %v44_v13 = vrot.slane %v28_v10, %v27_v9  ;;  %v36_v14 = vcombine.high %v28_v10, %v28_v10  ;;  %v37_v15 = vcombine.high %v35_v12, %v35_v12  ;;  %v51_v16 = vrot.slane %v35_v12, %v27_v9 }
   0xb   :  { %v73_v18 = vrot.slane %v44_v13, %v540_v11  ;;  %v66_v19 = vcombine.high %v44_v13, %v44_v13  ;;  %v58_v20 = vrot.slane %v36_v14, %v27_v9  ;;  %v65_v21 = vrot.slane %v37_v15, %v27_v9 }
   0xc   :  { %v89_v25 = vrot.slane %v51_v16, %v540_v11  ;;  %v67_v26 = vcombine.high %v51_v16, %v51_v16 }
   0xd   :  { %v110_v27 = vmul.f32 %v73_v18, %v545_v17  ;;  %v81_v28 = vrot.slane %v66_v19, %v540_v11  ;;  %v77_v29 = vrot.slane %v58_v20, %v540_v11  ;;  %v93_v30 = vrot.slane %v65_v21, %v540_v11 }
   0xe   :  { %v68_v32 = vcombine.high %v58_v20, %v58_v20  ;;  %v69_v33 = vcombine.high %v65_v21, %v65_v21  ;;  %v114_v42 = vmul.f32 %v89_v25, %v571_v31  ;;  %v97_v43 = vrot.slane %v67_v26, %v540_v11 }
   0xf   :  { %v119_v34 = vsel %vm118_vm0, %v110_v27, 0.0  ;;  %v112_v35 = vmul.f32 %v81_v28, %v551_v22  ;;  %v111_v36 = vmul.f32 %v77_v29, %v556_v23  ;;  %v115_v37 = vmul.f32 %v93_v30, %v561_v24 }
  0x10   :  { %120 = vadd.xlane.f32.xlu0 %v119_v34  ;;  %v85_v39 = vrot.slane %v68_v32, %v540_v11  ;;  %v101_v47 = vrot.slane %v69_v33, %v540_v11  ;;  %v131_v49 = vsel %vm118_vm0, %v114_v42, 0.0  ;;  %v116_v50 = vmul.f32 %v97_v43, %v590_v44 }
  0x11   :  { %v125_v40 = vsel %vm118_vm0, %v112_v35, 0.0  ;;  %v122_v41 = vsel %vm118_vm0, %v111_v36, 0.0  ;;  %v134_v45 = vsel %vm118_vm0, %v115_v37, 0.0  ;;  %v514_v19 = vmov 0  }
  0x12   :  { %126 = vadd.xlane.f32.xlu1 %v125_v40  ;;  %v113_v46 = vmul.f32 %v85_v39, %v580_v38  ;;  %v117_v52 = vmul.f32 %v101_v47, %v598_v48  ;;  %v137_v53 = vsel %vm118_vm0, %v116_v50, 0.0  ;;  %479 = vset.pattern.permute.xlu0 %v514_v19  ;;  %v211_v20 = vsub.s32 1, %v533_v4 }
  0x13   :  { %478 = vset.pattern.permute.xlu1 %v514_v19  ;;  %v215_v21 = vsub.s32 2, %v533_v4  ;;  %v219_v25 = vsub.s32 3, %v533_v4  ;;  %v223_v30 = vsub.s32 4, %v533_v4  ;;  %v227_v39 = vsub.s32 5, %v533_v4 }
  0x14   :  { %123 = vadd.xlane.f32.xlu0 %v122_v41  ;;  %v128_v51 = vsel %vm118_vm0, %v113_v46, 0.0  ;;  %v140_v54 = vsel %vm118_vm0, %v117_v52, 0.0  ;;  %v231_v43 = vsub.s32 6, %v533_v4  ;;  %v235_v47 = vsub.s32 7, %v533_v4 }
  0x16   :  { %135 = vadd.xlane.f32.xlu1 %v134_v45 }
  0x18   :  { %132 = vadd.xlane.f32.xlu0 %v131_v49 }
  0x1a   :  { %129 = vadd.xlane.f32.xlu1 %v128_v51 }
  0x1c   :  { %138 = vadd.xlane.f32.xlu0 %v137_v53 }
  0x1e   :  { %141 = vadd.xlane.f32.xlu1 %v140_v54 }
  0x9d   :  { %v121_v55 = vpop.xlane.xlu0 %120 }
  0x9e   :  { %v156_v60 = vrot.slane %v121_v55, %v536_v8 }
  0x9f   :  { %v127_v56 = vpop.xlane.xlu1 %126 }
  0xa0   :  { %v164_v63 = vrot.slane %v127_v56, %v536_v8 }
  0xa1   :  { %v124_v57 = vpop.xlane.xlu0 %123 }
  0xa2   :  { %v160_v58 = vrot.slane %v124_v57, %v536_v8 }
  0xa3   :  { %v607_v59 = vpop.xlane.xlu1 %135 }
  0xa4   :  { %v186_v62 = vsel %vm185_vm1, %v160_v58, %v156_v60  ;;  %v176_v6 = vrot.slane %v607_v59, %v536_v8 }
  0xa5   :  { %v133_v61 = vpop.xlane.xlu0 %132  ;;  %v188_v3 = vsel %vm187_vm2, %v164_v63, %v186_v62 }
  0xa6   :  { %v172_v2 = vrot.slane %v133_v61, %v536_v8 }
  0xa7   :  { %v130_v0 = vpop.xlane.xlu1 %129 }
  0xa8   :  { %v168_v1 = vrot.slane %v130_v0, %v536_v8 }
  0xa9   :  { %v139_v5 = vpop.xlane.xlu0 %138 }
  0xaa   :  { %v190_v7 = vsel %vm189_vm3, %v168_v1, %v188_v3  ;;  %v180_v9 = vrot.slane %v139_v5, %v536_v8 }
  0xab   :  { %v142_v10 = vpop.xlane.xlu1 %141  ;;  %v192_v12 = vsel %vm191_vm4, %v172_v2, %v190_v7 }
  0xac   :  { %v184_v13 = vrot.slane %v142_v10, %v536_v8  ;;  %v194_v14 = vsel %vm193_vm5, %v176_v6, %v192_v12 }
  0xad   :  { %v196_v15 = vsel %vm195_vm6, %v180_v9, %v194_v14 }
  0xae   :  { %v198_v16 = vsel %vm197_vm7, %v184_v13, %v196_v15 }
  0xaf   :  { %v201_v18 = vsel %vm200_vm8, %v198_v16, -inf }
  0xb0   :  { %202 = vmax.xlane.f32.xlu0 %v201_v18 }
 0x13d   :  { %v203_v26 = vpop.xlane.xlu0 %202 }
 0x13e   :  { %v208_v27 = vrot.slane %v203_v26, %v540_v11  ;;  %v212_v28 = vrot.slane %v203_v26, %v211_v20  ;;  %v216_v29 = vrot.slane %v203_v26, %v215_v21  ;;  %v220_v32 = vrot.slane %v203_v26, %v219_v25 }
 0x13f   :  { %v224_v40 = vrot.slane %v203_v26, %v223_v30  ;;  %v228_v11 = vrot.slane %v203_v26, %v227_v39  ;;  %v232_v49 = vrot.slane %v203_v26, %v231_v43  ;;  %v236_v54 = vrot.slane %v203_v26, %v235_v47 }
 0x140   :  { %v245_v33 = vsub.f32 %v121_v55, %v208_v27  ;;  %v246_v34 = vsub.f32 %v124_v57, %v212_v28  ;;  %v247_v35 = vsub.f32 %v127_v56, %v216_v29  ;;  %v248_v41 = vsub.f32 %v130_v0, %v220_v32 }
 0x141   :  { %v249_v45 = vsub.f32 %v133_v61, %v224_v40  ;;  %v250_v50 = vsub.f32 %v607_v59, %v228_v11  ;;  %v251_v55 = vsub.f32 %v139_v5, %v232_v49  ;;  %v252_v58 = vsub.f32 %v142_v10, %v236_v54 }
 0x142   :  { %v253_v36 = vmul.f32 1.442695, %v245_v33  ;;  %v255_v37 = vmul.f32 1.442695, %v246_v34  ;;  %v257_v42 = vmul.f32 1.442695, %v247_v35 }
 0x143   :  { %v259_v46 = vmul.f32 1.442695, %v248_v41  ;;  %v261_v51 = vmul.f32 1.442695, %v249_v45  ;;  %v263_v56 = vmul.f32 1.442695, %v250_v50 }
 0x144   :  { %481 = vpow2.f32 %v253_v36  ;;  %v265_v60 = vmul.f32 1.442695, %v251_v55  ;;  %v267_v4 = vmul.f32 1.442695, %v252_v58 }
 0x145   :  { %483 = vpow2.f32 %v255_v37 }
 0x146   :  { %485 = vpow2.f32 %v257_v42 }
 0x147   :  { %487 = vpow2.f32 %v259_v46 }
 0x148   :  { %489 = vpow2.f32 %v261_v51 }
 0x149   :  { %491 = vpow2.f32 %v263_v56 }
 0x14a   :  { %493 = vpow2.f32 %v265_v60 }
 0x14b   :  { %495 = vpow2.f32 %v267_v4 }
 0x14e   :  { %v482_v52 = vpop.eup %481 }
 0x14f   :  { %v484_v53 = vpop.eup %483  ;;  %278 = vperm.xlu1 %478, %v482_v52  }
 0x150   :  { %281 = vperm.xlu0 %479, %v484_v53   ;;  %v486_v57 = vpop.eup %485 }
 0x151   :  { %v488_v61 = vpop.eup %487 }
 0x152   :  { %v490_v59 = vpop.eup %489 }
 0x153   :  { %284 = vperm.xlu1 %478, %v486_v57   ;;  %v492_v62 = vpop.eup %491 }
 0x154   :  { %v494_v63 = vpop.eup %493 }
 0x155   :  { %v496_v0 = vpop.eup %495 }
 0x157   :  { %287 = vperm.xlu1 %478, %v488_v61  }
 0x15b   :  { %290 = vperm.xlu1 %478, %v490_v59  }
 0x15f   :  { %293 = vperm.xlu1 %478, %v492_v62  }
 0x163   :  { %296 = vperm.xlu1 %478, %v494_v63  }
 0x167   :  { %299 = vperm.xlu1 %478, %v496_v0  }
 0x1ce   :  { %v279_v1 = vpop.permute.xlu1 %278 }
 0x1cf   :  { %v282_v6 = vpop.permute.xlu0 %281  ;;  %v304_v10 = vrot.slane %v279_v1, %v536_v8  ;;  %v352_v34 = vmul.f32 %v279_v1, %v545_v17 }
 0x1d0   :  { %v308_v9 = vrot.slane %v282_v6, %v536_v8  ;;  %v353_v33 = vmul.f32 %v282_v6, %v556_v23 }
 0x1d1   :  { %v360_v39 = vsel %vm118_vm0, %v352_v34, 0.0 }
 0x1d2   :  { %v285_v2 = vpop.permute.xlu1 %284  ;;  %v333_v16 = vsel %vm185_vm1, %v308_v9, %v304_v10 }
 0x1d3   :  { %v312_v12 = vrot.slane %v285_v2, %v536_v8  ;;  %v354_v35 = vmul.f32 %v285_v2, %v551_v22  ;;  %v361_v22 = vrot.slane %v360_v39, 4 }
 0x1d5   :  { %v334_v19 = vsel %vm187_vm2, %v312_v12, %v333_v16  ;;  %v374_v40 = vsel %vm118_vm0, %v354_v35, 0.0  ;;  %v362_v50 = vadd.f32 %v361_v22, %v360_v39 }
 0x1d6   :  { %v288_v3 = vpop.permute.xlu1 %287  ;;  %v375_v11 = vrot.slane %v374_v40, 4 }
 0x1d7   :  { %v316_v13 = vrot.slane %v288_v3, %v536_v8  ;;  %v355_v36 = vmul.f32 %v288_v3, %v580_v38  ;;  %v363_v56 = vrot.slane %v362_v50, 2 }
 0x1d9   :  { %v335_v21 = vsel %vm189_vm3, %v316_v13, %v334_v19  ;;  %v381_v23 = vsel %vm118_vm0, %v355_v36, 0.0  ;;  %v364_v13 = vadd.f32 %v363_v56, %v362_v50 }
 0x1da   :  { %v291_v5 = vpop.permute.xlu1 %290  ;;  %v382_v45 = vrot.slane %v381_v23, 4 }
 0x1db   :  { %v320_v14 = vrot.slane %v291_v5, %v536_v8  ;;  %v356_v37 = vmul.f32 %v291_v5, %v571_v31 }
 0x1dc   :  { %v383_v53 = vadd.f32 %v382_v45, %v381_v23 }
 0x1dd   :  { %v336_v25 = vsel %vm191_vm4, %v320_v14, %v335_v21  ;;  %v388_v38 = vsel %vm118_vm0, %v356_v37, 0.0 }
 0x1de   :  { %v294_v7 = vpop.permute.xlu1 %293  ;;  %v389_v47 = vrot.slane %v388_v38, 4  ;;  %v384_v63 = vrot.slane %v383_v53, 2 }
 0x1df   :  { %v324_v18 = vrot.slane %v294_v7, %v536_v8  ;;  %v357_v41 = vmul.f32 %v294_v7, %v561_v24 }
 0x1e0   :  { %v390_v54 = vadd.f32 %v389_v47, %v388_v38  ;;  %v385_v14 = vadd.f32 %v384_v63, %v383_v53 }
 0x1e1   :  { %v337_v28 = vsel %vm193_vm5, %v324_v18, %v336_v25  ;;  %v395_v31 = vsel %vm118_vm0, %v357_v41, 0.0  ;;  %v365_v25 = vrot.slane %v364_v13, 1 }
 0x1e2   :  { %v297_v15 = vpop.permute.xlu1 %296  ;;  %v396_v51 = vrot.slane %v395_v31, 4  ;;  %v391_v2 = vrot.slane %v390_v54, 2 }
 0x1e3   :  { %v328_v20 = vrot.slane %v297_v15, %v536_v8  ;;  %v358_v42 = vmul.f32 %v297_v15, %v590_v44  ;;  %v376_v44 = vadd.f32 %v375_v11, %v374_v40  ;;  %v366_v37 = vadd.f32 %v365_v25, %v364_v13 }
 0x1e4   :  { %v397_v58 = vadd.f32 %v396_v51, %v395_v31  ;;  %v392_v16 = vadd.f32 %v391_v2, %v390_v54 }
 0x1e5   :  { %v338_v29 = vsel %vm195_vm6, %v328_v20, %v337_v28  ;;  %v402_v46 = vsel %vm118_vm0, %v358_v42, 0.0  ;;  %v377_v57 = vrot.slane %v376_v44, 2 }
 0x1e6   :  { %v300_v26 = vpop.permute.xlu1 %299  ;;  %v403_v52 = vrot.slane %v402_v46, 4  ;;  %v398_v6 = vrot.slane %v397_v58, 2  ;;  %v393_v28 = vrot.slane %v392_v16, 1 }
 0x1e7   :  { %v332_v27 = vrot.slane %v300_v26, %v536_v8  ;;  %v367_v8 = vsel %vm118_vm0, %v353_v33, 0.0  ;;  %v359_v17 = vmul.f32 %v300_v26, %v598_v48  ;;  %v378_v9 = vadd.f32 %v377_v57, %v376_v44 }
 0x1e8   :  { %v368_v43 = vrot.slane %v367_v8, 4  ;;  %v404_v61 = vadd.f32 %v403_v52, %v402_v46  ;;  %v399_v19 = vadd.f32 %v398_v6, %v397_v58  ;;  %v386_v26 = vrot.slane %v385_v14, 1 }
 0x1e9   :  { %v339_v30 = vsel %vm197_vm7, %v332_v27, %v338_v29  ;;  %v409_v49 = vsel %vm118_vm0, %v359_v17, 0.0  ;;  %v379_v20 = vrot.slane %v378_v9, 1  ;;  %v394_v42 = vadd.f32 %v393_v28, %v392_v16 }
 0x1ea   :  { %v341_v32 = vsel %vm200_vm8, %v339_v30, 0.0  ;;  %v369_v24 = vadd.f32 %v368_v43, %v367_v8  ;;  %v410_v48 = vrot.slane %v409_v49, 4  ;;  %v405_v10 = vrot.slane %v404_v61, 2 }
 0x1eb   :  { %342 = vadd.xlane.f32.xlu1 %v341_v32  ;;  %v400_v32 = vrot.slane %v399_v19, 1  ;;  %v380_v34 = vadd.f32 %v379_v20, %v378_v9  ;;  %v387_v8 = vadd.f32 %v386_v26, %v385_v14 }
 0x1ec   :  { %v370_v55 = vrot.slane %v369_v24, 2  ;;  %v411_v0 = vadd.f32 %v410_v48, %v409_v49  ;;  %v406_v21 = vadd.f32 %v405_v10, %v404_v61 }
 0x1ed   :  { %v401_v43 = vadd.f32 %v400_v32, %v399_v19 }
 0x1ee   :  { %v371_v5 = vadd.f32 %v370_v55, %v369_v24  ;;  %v412_v15 = vrot.slane %v411_v0, 2  ;;  %v407_v35 = vrot.slane %v406_v21, 1 }
 0x1f0   :  { %v372_v18 = vrot.slane %v371_v5, 1  ;;  %v413_v27 = vadd.f32 %v412_v15, %v411_v0  ;;  %v408_v45 = vadd.f32 %v407_v35, %v406_v21 }
 0x1f2   :  { %v373_v30 = vadd.f32 %v372_v18, %v371_v5  ;;  %v414_v39 = vrot.slane %v413_v27, 1 }
 0x1f4   :  { %v415_v24 = vadd.f32 %v414_v39, %v413_v27 }
 0x278   :  { %v343_v60 = vpop.xlane.xlu1 %342 }
 0x279   :  { %v417_v4 = vrot.slane %v343_v60, 1  ;;  %v418_v59 = vrot.slane %v343_v60, 2  ;;  %v419_v62 = vrot.slane %v343_v60, 3  ;;  %v420_v1 = vrot.slane %v343_v60, 4 }
 0x27a   :  { %497 = vrcp.f32 %v343_v60  ;;  %v421_v3 = vrot.slane %v343_v60, 5  ;;  %v422_v7 = vrot.slane %v343_v60, 6  ;;  %v423_v12 = vrot.slane %v343_v60, 7 }
 0x27b   :  { %499 = vrcp.f32 %v417_v4 }
 0x27c   :  { %501 = vrcp.f32 %v418_v59 }
 0x27d   :  { %503 = vrcp.f32 %v419_v62 }
 0x27e   :  { %505 = vrcp.f32 %v420_v1 }
 0x27f   :  { %507 = vrcp.f32 %v421_v3 }
 0x280   :  { %509 = vrcp.f32 %v422_v7 }
 0x281   :  { %511 = vrcp.f32 %v423_v12 }
 0x284   :  { %v498_v29 = vpop.eup %497 }
 0x285   :  { %v500_v33 = vpop.eup %499  ;;  %v433_v22 = vmul.f32 %v498_v29, %v366_v37 }
 0x286   :  { %v502_v36 = vpop.eup %501  ;;  %v435_v40 = vmul.f32 %v500_v33, %v373_v30 }
 0x287   :  { %v504_v41 = vpop.eup %503  ;;  %v437_v23 = vmul.f32 %v502_v36, %v380_v34 }
 0x288   :  { %v506_v17 = vpop.eup %505  ;;  %v439_v11 = vmul.f32 %v504_v41, %v387_v8  ;;  %v456_v38 = vrot.slane %v435_v40, 7 }
 0x289   :  { %v508_v31 = vpop.eup %507  ;;  %v441_v46 = vmul.f32 %v506_v17, %v394_v42  ;;  %v458_v47 = vrot.slane %v437_v23, 6 }
 0x28a   :  { %v510_v49 = vpop.eup %509  ;;  %v443_v50 = vmul.f32 %v508_v31, %v401_v43  ;;  %v457_v44 = vsel %vm185_vm1, %v456_v38, %v433_v22  ;;  %v460_v51 = vrot.slane %v439_v11, 5 }
 0x28b   :  { %v512_v52 = vpop.eup %511  ;;  %v445_v53 = vmul.f32 %v510_v49, %v408_v45  ;;  %v459_v48 = vsel %vm187_vm2, %v458_v47, %v457_v44  ;;  %v462_v54 = vrot.slane %v441_v46, 4 }
 0x28c   :  { %v447_v55 = vmul.f32 %v512_v52, %v415_v24  ;;  %v461_v56 = vsel %vm189_vm3, %v460_v51, %v459_v48  ;;  %v464_v57 = vrot.slane %v443_v50, 3 }
 0x28d   :  { %v463_v58 = vsel %vm191_vm4, %v462_v54, %v461_v56  ;;  %v466_v60 = vrot.slane %v445_v53, 2 }
 0x28e   :  { %v465_v61 = vsel %vm193_vm5, %v464_v57, %v463_v58  ;;  %v468_v4 = vrot.slane %v447_v55, 1 }
 0x28f   :  { %v467_v59 = vsel %vm195_vm6, %v466_v60, %v465_v61 }
 0x290   :  { %v469_v62 = vsel %vm197_vm7, %v468_v4, %v467_v59 }
 0x291   :  { %471 = vst.msk [vmem:[%s679_s2] sm:$0xff] %vm118_vm0, %v469_v62 }

</bundles_post_ra>
